<compile_context>
chip_gen: v7x
topology: tpu7x:2x2x1
jax: 0.10.0
libtpu: 0.0.40
codegen_flags: <defaults>
</compile_context>

<pallas_src>
import functools
import math

import jax
import jax.numpy as jnp
from jax.experimental import pallas as pl
from jax.experimental.pallas import tpu as pltpu


# ----------------------------------------------------------------------------- helpers
def _round_down(a, b):
    return (a // b) * b


def _round_up(a, b):
    return ((a + b - 1) // b) * b


def _cdiv(a, b):
    return -(-a // b)


def _min_sublane(itemsize):
    # f32 -> 8, bf16 -> 16, int8/fp8 -> 32 (dtype-aware second-minor multiple).
    return 8 * max(1, 4 // max(1, itemsize))


def _vmem_budget():
    """Tile byte targets + scoped VMEM limit (per-TensorCore conservative)."""
    phys = 64 << 20  # v7x per-TensorCore VMEM: safe lower bound for every generation
    try:
        phys = int(pltpu.get_tpu_info().vmem_capacity_bytes)
    except Exception:
        pass
    # get_tpu_info may report per-chip capacity on multi-core chips; clamp to a
    # per-TensorCore figure so the scoped limit never exceeds physical VMEM on v7x.
    per_core = min(phys, 64 << 20)
    vmem_limit = max(24 << 20, per_core // 2)           # 32 MiB typical
    # Tile budgets are f32 working-set bytes, derated for in-kernel f32 temporaries
    # (x in f32, xc, sq, hi/lo casts, mean/inv broadcasts) plus double-buffered in/out.
    tile_big = min(2 << 20, vmem_limit // 12)            # plain rows / channels_first
    tile_small = min(1 << 20, vmem_limit // 24)           # folded kernels (more temps)
    return tile_big, tile_small, vmem_limit


def _choose_row_tile(rows, row_width, itemsize, budget_bytes, min_steps=4):
    """Rows per block: f32-working-set byte budget, dtype-aware sublane multiple,
    and >= min_steps grid steps when possible (2 per v7x TensorCore)."""
    sub = _min_sublane(itemsize)
    if rows <= sub:
        return rows                                      # full extent: always legal
    tm = budget_bytes // max(1, row_width * 4)            # budget counts f32 temporaries
    tm = max(sub, _round_down(min(tm, rows), sub))
    target = max(sub, _round_up(_cdiv(rows, min_steps), sub))
    if target < tm:
        tm = target
    return tm


def _choose_lane_tile(n, min_steps, budget_bytes, col_bytes_f32):
    """Lane-axis tile: multiple of 128 (dense, unmasked vst), byte-budgeted, and
    >= min_steps blocks along this axis when possible."""
    if n <= 128:
        return n
    tl = budget_bytes // max(1, col_bytes_f32)
    tl = max(128, _round_down(min(tl, n), 128))
    target = max(128, _round_up(_cdiv(n, min_steps), 128))
    if target < tl:
        tl = target
    return tl


# Cached 0/1 fold matrices: trace-time constants per (C, K, mode).
_MASK_CACHE = {}


def _fold_masks(c, k, two_stage):
    key = (int(c), int(k), bool(two_stage))
    cached = _MASK_CACHE.get(key)
    if cached is None:
        l = k * c
        seg = jnp.arange(l, dtype=jnp.int32) // c
        if two_stage:
            kp = 128                                      # pad segment axis to a full lane tile
            r = (seg[:, None] == jnp.arange(kp, dtype=jnp.int32)[None, :]).astype(jnp.bfloat16)
            cached = (r, jnp.transpose(r))                 # reduce (L,KP), broadcast (KP,L)
        else:
            m = (seg[:, None] == seg[None, :]).astype(jnp.bfloat16)
            cached = (m,)
        _MASK_CACHE[key] = cached
    return cached


# ----------------------------------------------------------------------------- kernels
def _ln_rows_kernel(x_ref, wb_ref, o_ref, *, eps):
    # x: (TM, C) with the normalized axis on lanes.  Used when C is already lane-friendly.
    x = x_ref[...].astype(jnp.float32)
    wb = wb_ref[...]                                      # (2, C) f32, cast hoisted to wrapper
    mean = jnp.mean(x, axis=-1, keepdims=True)
    xc = x - mean
    var = jnp.mean(xc * xc, axis=-1, keepdims=True)       # biased variance
    inv = jax.lax.rsqrt(var + eps)
    o_ref[...] = (xc * inv * wb[0:1, :] + wb[1:2, :]).astype(o_ref.dtype)


def _ln_fold_blockdiag_kernel(x_ref, wb_ref, m_ref, o_ref, *, eps, inv_c, x_exact_bf16):
    # x: (TM, L) lane-dense; each 128-lane row holds K=L/C logical rows side by side.
    # m: (L, L) bf16 block-diagonal 0/1 "same segment" matrix -> segment sum (already
    # broadcast back over the segment) is one MXU matmul per hi/lo part.  Used for
    # small L (<= 256) where this form needs fewer MXU passes than reduce+broadcast.
    x = x_ref[...].astype(jnp.float32)
    m = m_ref[...]
    hi = x.astype(jnp.bfloat16)
    ssum = jnp.dot(hi, m, preferred_element_type=jnp.float32)
    if not x_exact_bf16:                                  # lo is exactly zero for bf16 inputs
        lo = (x - hi.astype(jnp.float32)).astype(jnp.bfloat16)
        ssum = ssum + jnp.dot(lo, m, preferred_element_type=jnp.float32)
    mean = ssum * inv_c
    xc = x - mean
    sq = xc * xc
    shi = sq.astype(jnp.bfloat16)
    slo = (sq - shi.astype(jnp.float32)).astype(jnp.bfloat16)
    var = (jnp.dot(shi, m, preferred_element_type=jnp.float32)
           + jnp.dot(slo, m, preferred_element_type=jnp.float32)) * inv_c
    inv = jax.lax.rsqrt(var + eps)
    wb = wb_ref[...]                                      # (2, L) f32 (weight/bias tiled K times)
    o_ref[...] = (xc * inv * wb[0:1, :] + wb[1:2, :]).astype(o_ref.dtype)


def _ln_fold_two_stage_kernel(x_ref, wb_ref, r_ref, b_ref, o_ref, *, eps, inv_c,
                              x_exact_bf16):
    # x: (TM, L) lane-dense.  r: (L, 128) 0/1 segment-reduce matrix, b: (128, L) 0/1
    # broadcast matrix (b == r.T).  Replaces the (L,L) block-diagonal matmul with a
    # reduce + broadcast pair: ~C/2x fewer MXU passes for L >= 384, and rsqrt runs on
    # the narrow (TM, 128) segment view.  hi/lo bf16 splits keep f32 accuracy (the 0/1
    # products are exact, accumulation is f32).
    x = x_ref[...].astype(jnp.float32)
    r = r_ref[...]
    b = b_ref[...]

    def seg_reduce(v, skip_lo):
        hi = v.astype(jnp.bfloat16)
        s = jnp.dot(hi, r, preferred_element_type=jnp.float32)
        if not skip_lo:
            lo = (v - hi.astype(jnp.float32)).astype(jnp.bfloat16)
            s = s + jnp.dot(lo, r, preferred_element_type=jnp.float32)
        return s                                          # (TM, 128) f32, exact

    def seg_broadcast(s):
        hi = s.astype(jnp.bfloat16)
        lo = (s - hi.astype(jnp.float32)).astype(jnp.bfloat16)
        return (jnp.dot(hi, b, preferred_element_type=jnp.float32)
                + jnp.dot(lo, b, preferred_element_type=jnp.float32))

    mean = seg_reduce(x, skip_lo=x_exact_bf16) * inv_c
    xc = x - seg_broadcast(mean)
    sq = xc * xc
    var = seg_reduce(sq, skip_lo=False) * inv_c            # biased variance, two-pass
    inv = jax.lax.rsqrt(var + eps)                         # cheap EUP work on (TM, 128)
    inv_b = seg_broadcast(inv)
    wb = wb_ref[...]                                       # (2, L) f32
    o_ref[...] = (xc * inv_b * wb[0:1, :] + wb[1:2, :]).astype(o_ref.dtype)


def _ln_cf_kernel(x_ref, wb_ref, o_ref, *, eps):
    # channels_first, NCHW tiled directly: x is (1, C, TL) -> C on sublanes, spatial on
    # lanes (dense).  Reduction over C is a cheap sublane/XLU reduce; no transposes.
    x = x_ref[...].astype(jnp.float32)
    wb = wb_ref[...]                                       # (2, C, 1) f32
    mean = jnp.mean(x, axis=1, keepdims=True)              # (1, 1, TL)
    xc = x - mean
    var = jnp.mean(xc * xc, axis=1, keepdims=True)         # biased variance
    inv = jax.lax.rsqrt(var + eps)
    o_ref[...] = (xc * inv * wb[0:1] + wb[1:2]).astype(o_ref.dtype)


# ---------------------------------------------------------------------------- wrappers
def _layernorm_rows(x2d, weight, bias, eps, tile_big, tile_small, vmem_limit):
    rows, c = x2d.shape
    itemsize = jnp.dtype(x2d.dtype).itemsize
    x_exact_bf16 = jnp.dtype(x2d.dtype) == jnp.dtype(jnp.bfloat16)
    cparams = pltpu.CompilerParams(dimension_semantics=("parallel",),
                                   vmem_limit_bytes=int(vmem_limit))

    # Lane-dense fold: put K rows side by side on the lane axis when C is lane-sparse.
    # L = lcm(C, 128); rows are zero-padded to a multiple of K (pad sliced off after).
    k = 128 // math.gcd(c, 128)
    l = k * c
    if k > 1 and l <= 1024:
        rows_p = _round_up(rows, k)
        xp = x2d if rows_p == rows else jnp.pad(x2d, ((0, rows_p - rows), (0, 0)))
        r_rows = rows_p // k
        xf = xp.reshape(r_rows, l)                          # free reshape (row-major)
        wb = jnp.stack([jnp.tile(weight, k), jnp.tile(bias, k)]).astype(jnp.float32)
        two_stage = l > 256
        masks = _fold_masks(c, k, two_stage)
        tm = _choose_row_tile(r_rows, l, itemsize, tile_small)
        if two_stage:
            kern = functools.partial(_ln_fold_two_stage_kernel, eps=float(eps),
                                     inv_c=1.0 / float(c), x_exact_bf16=x_exact_bf16)
            mask_specs = [pl.BlockSpec((l, 128), lambda i: (0, 0)),
                          pl.BlockSpec((128, l), lambda i: (0, 0))]
        else:
            kern = functools.partial(_ln_fold_blockdiag_kernel, eps=float(eps),
                                     inv_c=1.0 / float(c), x_exact_bf16=x_exact_bf16)
            mask_specs = [pl.BlockSpec((l, l), lambda i: (0, 0))]
        yf = pl.pallas_call(
            kern,
            out_shape=jax.ShapeDtypeStruct((r_rows, l), x2d.dtype),
            grid_spec=pltpu.PrefetchScalarGridSpec(
                num_scalar_prefetch=0,
                grid=(_cdiv(r_rows, tm),),
                in_specs=[pl.BlockSpec((tm, l), lambda i: (i, 0)),
                          pl.BlockSpec((2, l), lambda i: (0, 0))] + mask_specs,
                out_specs=pl.BlockSpec((tm, l), lambda i: (i, 0)),
            ),
            compiler_params=cparams,
        )(xf, wb, *masks)
        y2d = yf.reshape(rows_p, c)
        return y2d if rows_p == rows else y2d[:rows]

    # Plain row kernel (C already a multiple of 128 / large, or fold not applicable).
    # TODO(synk): C with lcm(C,128) > 1024 (e.g. 200) still lands here with a
    # non-128-multiple last dim (masked partial stores); could pad C with a lane mask.
    wb = jnp.stack([weight, bias]).astype(jnp.float32)
    tm = _choose_row_tile(rows, c, itemsize, tile_big)
    return pl.pallas_call(
        functools.partial(_ln_rows_kernel, eps=float(eps)),
        out_shape=jax.ShapeDtypeStruct((rows, c), x2d.dtype),
        grid_spec=pltpu.PrefetchScalarGridSpec(
            num_scalar_prefetch=0,
            grid=(_cdiv(rows, tm),),
            in_specs=[pl.BlockSpec((tm, c), lambda i: (i, 0)),
                      pl.BlockSpec((2, c), lambda i: (0, 0))],
            out_specs=pl.BlockSpec((tm, c), lambda i: (i, 0)),
        ),
        compiler_params=cparams,
    )(x2d, wb)


def _layernorm_channels_first(x, weight, bias, eps, tile_big, vmem_limit):
    b, c, h, w = x.shape
    hw = h * w
    x3 = x.reshape(b, c, hw)                                # free reshape, no transpose
    wb = jnp.stack([weight, bias]).astype(jnp.float32).reshape(2, c, 1)
    # TODO(synk): for very wide C (c*128 f32 working set > vmem_limit) add a two-pass
    # variant that accumulates over a C grid axis instead of holding the full-C block.
    min_steps = max(1, _cdiv(4, b))                          # >= 4 total grid steps when possible
    tl = _choose_lane_tile(hw, min_steps, tile_big, c * 4)
    y3 = pl.pallas_call(
        functools.partial(_ln_cf_kernel, eps=float(eps)),
        out_shape=jax.ShapeDtypeStruct((b, c, hw), x.dtype),
        grid_spec=pltpu.PrefetchScalarGridSpec(
            num_scalar_prefetch=0,
            grid=(b, _cdiv(hw, tl)),
            in_specs=[pl.BlockSpec((1, c, tl), lambda i, j: (i, 0, j)),
                      pl.BlockSpec((2, c, 1), lambda i, j: (0, 0, 0))],
            out_specs=pl.BlockSpec((1, c, tl), lambda i, j: (i, 0, j)),
        ),
        compiler_params=pltpu.CompilerParams(
            dimension_semantics=("parallel", "parallel"),
            vmem_limit_bytes=int(vmem_limit)),
    )(x3, wb)
    return y3.reshape(b, c, h, w)


def layer_norm(x, weight, bias, eps=1e-6, data_format="channels_last"):
    """Pallas-backed equivalent of the PyTorch LayerNorm module forward."""
    if data_format not in ("channels_last", "channels_first"):
        raise NotImplementedError
    tile_big, tile_small, vmem_limit = _vmem_budget()
    if data_format == "channels_last":
        c = x.shape[-1]
        assert weight.shape == (c,) and bias.shape == (c,)
        x2d = x.reshape(-1, c)
        y2d = _layernorm_rows(x2d, weight, bias, eps, tile_big, tile_small, vmem_limit)
        return y2d.reshape(x.shape)
    else:  # channels_first: NCHW, normalize over C (axis 1) — no transposes
        assert x.ndim == 4
        c = x.shape[1]
        assert weight.shape == (c,) and bias.shape == (c,)
        return _layernorm_channels_first(x, weight, bias, eps, tile_big, vmem_limit)


# --------------------------------------------------------------------------- reference
def _layer_norm_ref(x, weight, bias, eps, data_format):
    if data_format == "channels_last":
        u = jnp.mean(x, axis=-1, keepdims=True)
        s = jnp.mean((x - u) ** 2, axis=-1, keepdims=True)
        return (x - u) / jnp.sqrt(s + eps) * weight + bias
    else:
        u = jnp.mean(x, axis=1, keepdims=True)
        s = jnp.mean((x - u) ** 2, axis=1, keepdims=True)
        xn = (x - u) / jnp.sqrt(s + eps)
        return weight[None, :, None, None] * xn + bias[None, :, None, None]


if __name__ == "__main__":
    key = jax.random.PRNGKey(0)
    k1, k2, k3, k4, k5, k6, k7, k8, k9, k10 = jax.random.split(key, 10)
    eps = 1e-6

    # Module __init__ sets weight=ones, bias=zeros; perturb so the affine path is exercised.
    C = 32
    weight = jnp.ones((C,), jnp.float32) + 0.1 * jax.random.normal(k3, (C,))
    bias = jnp.zeros((C,), jnp.float32) + 0.1 * jax.random.normal(k4, (C,))

    # channels_first: NCHW input (transpose-free kernel, C on sublanes).
    x_cf = jax.random.normal(k1, (2, C, 16, 16), jnp.float32)
    y_cf = jax.block_until_ready(layer_norm(x_cf, weight, bias, eps, "channels_first"))
    ref_cf = _layer_norm_ref(x_cf, weight, bias, eps, "channels_first")
    assert jnp.max(jnp.abs(y_cf - ref_cf)) < 1e-4

    # channels_last with C=32 < 128: lane-folded block-diagonal path (L=128).
    x_cl = jax.random.normal(k2, (2, 8, 8, C), jnp.float32)
    y_cl = jax.block_until_ready(layer_norm(x_cl, weight, bias, eps, "channels_last"))
    ref_cl = _layer_norm_ref(x_cl, weight, bias, eps, "channels_last")
    assert jnp.max(jnp.abs(y_cl - ref_cl)) < 1e-4

    # channels_last with C=96 and an odd row count (2*5*7=70): exercises the row
    # padding and the two-stage reduce+broadcast path (L=384).
    C3 = 96
    w3 = jnp.ones((C3,), jnp.float32) + 0.1 * jax.random.normal(k8, (C3,))
    b3 = jnp.zeros((C3,), jnp.float32) + 0.1 * jax.random.normal(k9, (C3,))
    x3 = jax.random.normal(k10, (2, 5, 7, C3), jnp.float32)
    y3 = jax.block_until_ready(layer_norm(x3, w3, b3, eps, "channels_last"))
    ref3 = _layer_norm_ref(x3, w3, b3, eps, "channels_last")
    assert jnp.max(jnp.abs(y3 - ref3)) < 1e-4

    # channels_last with C=128: plain lane-dense row-kernel path.
    C2 = 128
    w2 = jnp.ones((C2,), jnp.float32) + 0.1 * jax.random.normal(k6, (C2,))
    b2 = jnp.zeros((C2,), jnp.float32) + 0.1 * jax.random.normal(k7, (C2,))
    x2 = jax.random.normal(k5, (2, 16, C2), jnp.float32)
    y2 = jax.block_until_ready(layer_norm(x2, w2, b2, eps, "channels_last"))
    ref2 = _layer_norm_ref(x2, w2, b2, eps, "channels_last")
    assert jnp.max(jnp.abs(y2 - ref2)) < 1e-4

    print("KERNEL_OK")
</pallas_src>

<mosaic_0001>
module attributes {stable_mosaic.version = 11 : i64} {
  func.func @_ln_cf_kernel(%arg0: i32, %arg1: i32, %arg2: memref<1x32x128xf32, #tpu.memory_space<vmem>>, %arg3: memref<2x32x1xf32, #tpu.memory_space<vmem>>, %arg4: memref<1x32x128xf32, #tpu.memory_space<vmem>>) attributes {dimension_semantics = [#tpu.dimension_semantics<parallel>, #tpu.dimension_semantics<parallel>], iteration_bounds = array<i64: 2, 2>, scalar_prefetch = 0 : i64, scratch_operands = 0 : i64, tpu.core_type = #tpu.core_type<tc>, window_params = [{transform_indices = @transform_0, window_bounds = array<i64: 1, 32, 128>}, {pipeline_mode = #tpu.pipeline_mode<synchronous>, transform_indices = @transform_1, window_bounds = array<i64: 2, 32, 1>}, {transform_indices = @transform_2, window_bounds = array<i64: 1, 32, 128>}]} {
    %c0 = arith.constant 0 : index
    %c0_0 = arith.constant 0 : index
    %c0_1 = arith.constant 0 : index
    %0 = vector.load %arg2[%c0, %c0_0, %c0_1] : memref<1x32x128xf32, #tpu.memory_space<vmem>>, vector<1x32x128xf32>
    %c0_2 = arith.constant 0 : index
    %c0_3 = arith.constant 0 : index
    %c0_4 = arith.constant 0 : index
    %1 = vector.load %arg3[%c0_2, %c0_3, %c0_4] : memref<2x32x1xf32, #tpu.memory_space<vmem>>, vector<2x32x1xf32>
    %cst = arith.constant dense<0.000000e+00> : vector<1x128xf32>
    %2 = vector.multi_reduction <add>, %0, %cst [1] : vector<1x32x128xf32> to vector<1x128xf32>
    %3 = vector.shape_cast %2 : vector<1x128xf32> to vector<1x1x128xf32>
    %cst_5 = arith.constant 3.200000e+01 : f32
    %4 = vector.broadcast %cst_5 : f32 to vector<1x1x128xf32>
    %5 = arith.divf %3, %4 : vector<1x1x128xf32>
    %6 = vector.broadcast %5 : vector<1x1x128xf32> to vector<1x32x128xf32>
    %7 = arith.subf %0, %6 : vector<1x32x128xf32>
    %8 = arith.mulf %7, %7 : vector<1x32x128xf32>
    %cst_6 = arith.constant dense<0.000000e+00> : vector<1x128xf32>
    %9 = vector.multi_reduction <add>, %8, %cst_6 [1] : vector<1x32x128xf32> to vector<1x128xf32>
    %10 = vector.shape_cast %9 : vector<1x128xf32> to vector<1x1x128xf32>
    %cst_7 = arith.constant 3.200000e+01 : f32
    %11 = vector.broadcast %cst_7 : f32 to vector<1x1x128xf32>
    %12 = arith.divf %10, %11 : vector<1x1x128xf32>
    %cst_8 = arith.constant 9.99999997E-7 : f32
    %13 = vector.broadcast %cst_8 : f32 to vector<1x1x128xf32>
    %14 = arith.addf %12, %13 : vector<1x1x128xf32>
    %15 = math.rsqrt %14 : vector<1x1x128xf32>
    %16 = vector.broadcast %15 : vector<1x1x128xf32> to vector<1x32x128xf32>
    %17 = arith.mulf %7, %16 : vector<1x32x128xf32>
    %18 = vector.extract_strided_slice %1 {offsets = [0, 0, 0], sizes = [1, 32, 1], strides = [1, 1, 1]} : vector<2x32x1xf32> to vector<1x32x1xf32>
    %19 = vector.broadcast %18 : vector<1x32x1xf32> to vector<1x32x128xf32>
    %20 = arith.mulf %17, %19 : vector<1x32x128xf32>
    %21 = vector.extract_strided_slice %1 {offsets = [1, 0, 0], sizes = [1, 32, 1], strides = [1, 1, 1]} : vector<2x32x1xf32> to vector<1x32x1xf32>
    %22 = vector.broadcast %21 : vector<1x32x1xf32> to vector<1x32x128xf32>
    %23 = arith.addf %20, %22 : vector<1x32x128xf32>
    %c0_9 = arith.constant 0 : index
    %c0_10 = arith.constant 0 : index
    %c0_11 = arith.constant 0 : index
    %24 = vector.load %arg4[%c0_9, %c0_10, %c0_11] : memref<1x32x128xf32, #tpu.memory_space<vmem>>, vector<1x32x128xf32>
    tpu.vector_store %arg4[%c0_9, %c0_10, %c0_11], %23 {strides = array<i32>} : memref<1x32x128xf32, #tpu.memory_space<vmem>>, vector<1x32x128xf32>,
    return
  }
  func.func @transform_0(%arg0: i32, %arg1: i32) -> (i32, i32, i32) {
    %c0_i32 = arith.constant 0 : i32
    %c0_i32_0 = arith.constant 0 : i32
    return %arg0, %c0_i32, %arg1 : i32, i32, i32
  }
  func.func @transform_1(%arg0: i32, %arg1: i32) -> (i32, i32, i32) {
    %c0_i32 = arith.constant 0 : i32
    %c0_i32_0 = arith.constant 0 : i32
    %c0_i32_1 = arith.constant 0 : i32
    %c0_i32_2 = arith.constant 0 : i32
    return %c0_i32, %c0_i32_0, %c0_i32_1 : i32, i32, i32
  }
  func.func @transform_2(%arg0: i32, %arg1: i32) -> (i32, i32, i32) {
    %c0_i32 = arith.constant 0 : i32
    %c0_i32_0 = arith.constant 0 : i32
    return %arg0, %c0_i32, %arg1 : i32, i32, i32
  }
}

</mosaic_0001>

<bundles_post_ra>
// kernel: tpu_custom_call.1
= control target key start
LH: loop header
LB: loop body
LE: loop exit
PB: predicated region body
PF: predicated region fallthrough
CT: control target
= control target key end

     0   :  { %7 = vsyncpa [#allocation3], 0  ;;  %s862_s0 = inlined_call_operand.hbm [shape: f32[2,32,256], index: 0, kind: input, shape index: {}]   ;;  %s863_s1 = inlined_call_operand.vmem [shape: f32[2,32,1], index: 1, kind: input, shape index: {}]   ;;  %s864_s2 = inlined_call_operand.hbm [shape: f32[2,32,256], index: 2, kind: output, shape index: {}]  }
   0x1   :  { %9 = vsyncpa [#allocation3 + $0x1], 0 }
   0x2   :  { %10 = vsyncpa [#allocation4], 0 }
   0x3   :  { %12 = vsyncpa [#allocation4 + $0x1], 0  ;;  %s639_s9 = smov 0   ;;  %s641_s10 = smov 0  }
   0x4   :  { %s643_s11 = smov 0   ;;  %s645_s12 = smov 0  }
   0x5   :  { %s647_s13 = smov 0   ;;  %s649_s14 = smov 0  }
   0x6   :  { %s651_s15 = smov 0   ;;  %s653_s16 = smov 0  }
   0x7 LB: > { %s381_s17 = sadd.s32 4294967295, %s613_s16   ;;  %s382_s18 = sadd.s32 4294967294, %s613_s16   ;;  %s613_s16 = sphi %s653_s16, %s18_s16   ;;  %s609_s15 = sphi %s651_s15, %s879_s15   ;;  %s605_s14 = sphi %s649_s14, %s878_s14   ;;  %s601_s13 = sphi %s647_s13, %s877_s13   ;;  %s597_s12 = sphi %s645_s12, %s876_s12   ;;  %s593_s11 = sphi %s643_s11, %s875_s11   ;;  %s589_s10 = sphi %s641_s10, %s874_s10   ;;  %s585_s9 = sphi %s639_s9, %s873_s9  }
   0x8   : > { %s27_s19 = sadd.s32 1, %s605_s14  ;;  %s30_s20 = sadd.s32 1, %s609_s15 }
   0x9   : > { %p28_p0 = scmp.ge.s32.totalorder %s27_s19, 2  ;;  %s39_s21 = sadd.s32 1, %s593_s11 }
   0xa   : > { %p46_p1 = scmp.ne.s32.totalorder %s593_s11, %s589_s10  ;;  %p47_p2 = scmp.eq.s32.totalorder %s613_s16, 0 }
   0xb   : > { %s881_s19 = smov (%p28_p0, %s27_s19), 0  ;;  %s883_s20 = smov (!%p28_p0, %s30_s20), %s609_s15 }
   0xc   : > { %s35_s22 = ssub.s32 %s605_s14, %s881_s19  ;;  %p692_p3 = por %p47_p2, %p46_p1 }
   0xd   : > { %p32_p4 = scmp.ge.s32.totalorder %s883_s20, 2  ;;  %p52_p5 = scmp.ne.s32.totalorder %s589_s10, %s585_s9 }
   0xe   : > { %p53_p6 = scmp.eq.s32.totalorder %s381_s17, 0  ;;  %p99_p7 = scmp.eq.s32.totalorder %s381_s17, 3 }
   0xf   : > { %s885_s20 = smov (%p32_p4, %s883_s20), 0  ;;  %p105_p10 = scmp.eq.s32.totalorder %s382_s18, 3 }
  0x10   : > { %p700_p8 = por %p53_p6, %p52_p5  ;;  %p704_p9 = por %p99_p7, %p46_p1 }
  0x11   : > { %s34_s26 = ssub.s32 %s609_s15, %s885_s20  ;;  %p710_p12 = por %p105_p10, %p52_p5 }
  0x12   : > { %s868_s25 = scalar_select %p704_p9, 1, 0 }
  0x13   : > { %s36_s27 = sor.u32 %s35_s22, %s34_s26  ;;  %p408_p13 = scmp.lt.s32.totalorder %s613_s16, 4 }
  0x14   : > { %p37_p11 = scmp.eq.s32.totalorder %s36_s27, 0  ;;  %s128_s29 = sand.u32 1, %s593_s11  }
  0x15   : > { %s869_s28 = scalar_select %p710_p12, 1, 0 }
  0x16   : > { %s717_s30 = scalar_select %p37_p11, %s593_s11, %s39_s21  }
  0x17   : > { %s385_s3 = sshll.u32 %s128_s29, 5  ;;  %s386_s4 = sshll.u32 %s609_s15, 3 }
  0x18   : > { %s137_s5 = sadd.s32 %s605_s14, %s386_s4  ;;  %s132_s6 = scalar_lea.vmem [#allocation2], %s385_s3 }
  0x19   : > { %s140_s7 = sshll.u32 %s132_s6, 4  ;;  %s387_s8 = sshll.u32 %s137_s5, 7  ;;  %s721_s7 = int_to_ptr.vmem [resolvable:$true] %s140_s7 }
  0x1a   : > { %s726_s22 = scalar_lea.hbm %s862_s0, %s387_s8  ;;  %p730_p0 = pnand %p408_p13, %p692_p3 }
  0x1b   : > { %s734_s26 = scalar_lea.sflag [#allocation3], %s128_s29  ;;  %s485_s27 = scalar_lea.hbm %s726_s22, 512 }
  0x1c   : > { %p486_p1 = scmp.ne.s32.totalorder %s726_s22, %s485_s27  ;;  %p487_p2 = pneg %p730_p0 }
  0x1d   : > { %s490_s4 = scalar_lea.hbm %s862_s0, 2048  ;;  %p491_p3 = scmp.lt.u32.totalorder %s726_s22, %s862_s0 }
  0x1e   : > { %p488_p4 = pnand %p487_p2, %p486_p1  ;;  %p492_p6 = scmp.lt.u32.totalorder %s490_s4, %s485_s27 }
  0x1f   : > { %p494_p10 = scmp.lt.u32.totalorder %s485_s27, %s726_s22 }
  0x20   : > { %p489_p5 = pneg %p488_p4  ;;  %p493_p7 = por %p492_p6, %p491_p3 }
  0x22   : > { %p495_p11 = por %p494_p10, %p493_p7 }
  0x24   : > { %p496_p13 = pnand %p495_p11, %p489_p5 }
  0x26   : > { %499 = shalt.err (!%p496_p13)
}
  0x27   : > { %s500_s29 = scalar_lea.vmem %s721_s7, 512  ;;  %s615_s8 = smov [#allocation2]  }
  0x28   : > { %p501_p1 = scmp.ne.s32.totalorder %s721_s7, %s500_s29  ;;  %s505_s17 = sshll.u32 %s615_s8, 4  ;;  %s506_s17 = int_to_ptr.vmem [resolvable:$false] %s505_s17 }
  0x29   : > { %s507_s18 = scalar_lea.vmem %s506_s17, 1024  ;;  %p508_p9 = scmp.lt.s32.totalorder %s721_s7, %s506_s17 }
  0x2a   : > { %p503_p4 = pnand %p501_p1, %p487_p2  ;;  %p509_p3 = scmp.lt.s32.totalorder %s507_s18, %s500_s29 }
  0x2c   : > { %p504_p12 = pneg %p503_p4  ;;  %p510_p6 = por %p509_p3, %p508_p9 }
  0x2e   : > { %p511_p7 = pnand %p510_p6, %p504_p12 }
  0x30   : > { %514 = shalt.err (!%p511_p7)
}
  0x31   : > { %s616_s27 = smov 256   ;;  %s617_s23 = smov 128  }
  0x32   : > { %s618_s3 = smov 8   ;;  %p388_p2 = scmp.ge.s32.totalorder %s613_s16, 1 }
  0x33   : > { %403 = dma.hbm_to_vmem [thread:$0]  (!%p730_p0), %s726_s22, 512, %s721_s7, %s734_s26, %s616_s27, %s617_s23, %s618_s3  }
  0x34   : > { %p148_p5 = scmp.lt.s32.totalorder %s613_s16, 5 }
  0x36   : > { %p149_p10 = pnand %p388_p2, %p148_p5 }
  0x37   : > { %s765_s4 = sand.u32 (!%p149_p10), 1, %s589_s10  }
  0x38   : > { %152 = sbr.rel (%p149_p10) target bundleno = 224 (0xe0), region = 28  ;;  %s389_s5 = sshll.u32 (!%p149_p10), %s765_s4, 5 }
  0x39   : > { %s155_s6 = scalar_lea.sflag (!%p149_p10), [#allocation3], %s765_s4  ;;  %s158_s29 = scalar_lea.vmem (!%p149_p10), [#allocation2], %s389_s5 }
  0x3f   : > { %576 = dma.done.wait (%p700_p8), %s155_s6, 512  }
  0x40   : > { %578 = vsyncadd (%p700_p8), %s155_s6, 4294966784  ;;  %v619_v0 = vmov 0   ;;  %v185_v1 = vld [vmem:[%s863_s1 + $0x10] sm:$0xff]  ;;  %v183_v2 = vld [vmem:[%s863_s1] sm:$0xff]  ;;  %s178_s17 = scalar_lea.vmem [#allocation5], %s389_s5  ;;  %s279_s27 = scalar_lea.sflag [#allocation4], %s765_s4 }
  0x41   : > { %482 = vset.pattern.permute.xlu1 %v619_v0  ;;  %481 = vset.pattern.permute.xlu0 %v619_v0  ;;  %v186_v3 = vld [vmem:[%s863_s1 + $0x18] sm:$0xff]  ;;  %v184_v4 = vld [vmem:[%s863_s1 + $0x8] sm:$0xff]  ;;  %v187_v6 = vld [vmem:[%s863_s1 + $0x20] sm:$0xff]  ;;  %s293_s18 = sshll.u32 %s178_s17, 4  ;;  %p871_p9 = scmp.ne.s32.totalorder %s868_s25, 0  ;;  %s803_s18 = int_to_ptr.vmem [resolvable:$true] %s293_s18 }
  0x42   : > { %238 = vperm.xlu1 %482, %v185_v1   ;;  %228 = vperm.xlu0 %481, %v183_v2   ;;  %v188_v5 = vld [vmem:[%s863_s1 + $0x28] sm:$0xff]  ;;  %v190_v7 = vld [vmem:[%s863_s1 + $0x38] sm:$0xff]  ;;  %v189_v8 = vld [vmem:[%s863_s1 + $0x30] sm:$0xff]  ;;  %s515_s23 = scalar_lea.vmem %s803_s18, 512  ;;  %s620_s3 = smov [#allocation5]  }
  0x43   : > { %v179_v9 = vld [vmem:[%s158_s29] sm:$0xff]  ;;  %v180_v10 = vld [vmem:[%s158_s29 + $0x8] sm:$0xff]  ;;  %v181_v12 = vld [vmem:[%s158_s29 + $0x10] sm:$0xff]  ;;  %p516_p8 = scmp.ne.s32.totalorder %s803_s18, %s515_s23  ;;  %s519_s6 = sshll.u32 %s620_s3, 4  ;;  %s520_s6 = int_to_ptr.vmem [resolvable:$false] %s519_s6 }
  0x44   : > { %v191_v11 = vadd.f32 %v180_v10, %v179_v9  ;;  %v182_v14 = vld [vmem:[%s158_s29 + $0x18] sm:$0xff]  ;;  %s392_s29 = sshll.u32 %s601_s13, 3  ;;  %s521_s7 = scalar_lea.vmem %s520_s6, 1024 }
  0x45   : > { %s290_s8 = sadd.s32 %s597_s12, %s392_s29  ;;  %p517_p12 = pnand %p516_p8, %p871_p9 }
  0x46   : > { %243 = vperm.xlu1 %482, %v186_v3   ;;  %233 = vperm.xlu0 %481, %v184_v4   ;;  %v192_v13 = vadd.f32 %v191_v11, %v181_v12  ;;  %s393_s24 = sshll.u32 %s290_s8, 7  ;;  %p522_p11 = scmp.lt.s32.totalorder %s803_s18, %s520_s6 }
  0x47   : > { %s808_s5 = scalar_lea.hbm %s864_s2, %s393_s24  ;;  %p518_p0 = pneg %p517_p12 }
  0x48   : > { %v193_v15 = vadd.f32 %v192_v13, %v182_v14  ;;  %p523_p13 = scmp.lt.s32.totalorder %s521_s7, %s515_s23 }
  0x4a   : > { %257 = vperm.xlu1 %482, %v188_v5   ;;  %252 = vperm.xlu0 %481, %v187_v6   ;;  %v194_v16 = vrot.slane %v193_v15, 4  ;;  %p524_p1 = por %p523_p13, %p522_p11 }
  0x4c   : > { %v195_v17 = vadd.f32 %v194_v16, %v193_v15  ;;  %p525_p4 = pnand %p524_p1, %p518_p0 }
  0x4e   : > { %267 = vperm.xlu1 %482, %v190_v7   ;;  %262 = vperm.xlu0 %481, %v189_v8   ;;  %v196_v18 = vrot.slane %v195_v17, 2 }
  0x50   : > { %v197_v19 = vadd.f32 %v196_v18, %v195_v17 }
  0x52   : > { %v198_v20 = vrot.slane %v197_v19, 1 }
  0x54   : > { %v199_v21 = vadd.f32 %v198_v20, %v197_v19 }
  0x56   : > { %v201_v22 = vmul.f32 0.03125, %v199_v21 }
  0x58   : > { %v202_v23 = vsub.f32 %v179_v9, %v201_v22  ;;  %v203_v24 = vsub.f32 %v180_v10, %v201_v22  ;;  %v204_v25 = vsub.f32 %v181_v12, %v201_v22  ;;  %v205_v28 = vsub.f32 %v182_v14, %v201_v22 }
  0x5a   : > { %v206_v26 = vmul.f32 %v202_v23, %v202_v23  ;;  %v207_v27 = vmul.f32 %v203_v24, %v203_v24  ;;  %v208_v29 = vmul.f32 %v204_v25, %v204_v25  ;;  %v209_v31 = vmul.f32 %v205_v28, %v205_v28 }
  0x5c   : > { %v210_v30 = vadd.f32 %v207_v27, %v206_v26 }
  0x5e   : > { %v211_v32 = vadd.f32 %v210_v30, %v208_v29 }
  0x60   : > { %v212_v33 = vadd.f32 %v211_v32, %v209_v31 }
  0x62   : > { %v213_v34 = vrot.slane %v212_v33, 4 }
  0x64   : > { %v214_v35 = vadd.f32 %v213_v34, %v212_v33 }
  0x66   : > { %v215_v36 = vrot.slane %v214_v35, 2 }
  0x68   : > { %v216_v37 = vadd.f32 %v215_v36, %v214_v35 }
  0x6a   : > { %v217_v38 = vrot.slane %v216_v37, 1 }
  0x6c   : > { %v218_v39 = vadd.f32 %v217_v38, %v216_v37 }
  0x6e   : > { %v219_v40 = vmul.f32 0.03125, %v218_v39 }
  0x70   : > { %v220_v41 = vadd.f32 1e-06, %v219_v40 }
  0x72   : > { %483 = vrsqrt.f32 %v220_v41 }
  0x7c   : > { %v484_v42 = vpop.eup %483 }
  0x7d   : > { %v222_v45 = vmul.f32 %v484_v42, %v202_v23  ;;  %v223_v46 = vmul.f32 %v484_v42, %v203_v24  ;;  %v224_v49 = vmul.f32 %v484_v42, %v204_v25  ;;  %v225_v51 = vmul.f32 %v484_v42, %v205_v28 }
  0xc1   : > { %v239_v43 = vpop.permute.xlu1 %238  ;;  %v229_v44 = vpop.permute.xlu0 %228 }
  0xc2   : > { %v246_v50 = vmul.f32 %v229_v44, %v222_v45  ;;  %v248_v57 = vmul.f32 %v239_v43, %v224_v49 }
  0xc5   : > { %v244_v47 = vpop.permute.xlu1 %243  ;;  %v234_v48 = vpop.permute.xlu0 %233 }
  0xc6   : > { %v247_v52 = vmul.f32 %v234_v48, %v223_v46  ;;  %v249_v58 = vmul.f32 %v244_v47, %v225_v51 }
  0xc9   : > { %v258_v53 = vpop.permute.xlu1 %257  ;;  %v253_v54 = vpop.permute.xlu0 %252 }
  0xca   : > { %v271_v55 = vadd.f32 %v258_v53, %v247_v52  ;;  %v270_v56 = vadd.f32 %v253_v54, %v246_v50 }
  0xcc   : > { %275 = vst [vmem:[%s178_s17 + $0x8] sm:$0xff] %v271_v55  ;;  %274 = vst [vmem:[%s178_s17] sm:$0xff] %v270_v56 }
  0xcd   : > { %v268_v59 = vpop.permute.xlu1 %267  ;;  %v263_v60 = vpop.permute.xlu0 %262 }
  0xce   : > { %v273_v61 = vadd.f32 %v268_v59, %v249_v58  ;;  %v272_v62 = vadd.f32 %v263_v60, %v248_v57 }
  0xd0   : > { %277 = vst [vmem:[%s178_s17 + $0x18] sm:$0xff] %v273_v61  ;;  %276 = vst [vmem:[%s178_s17 + $0x10] sm:$0xff] %v272_v62 }
  0xd1   : > { %528 = shalt.err (!%p525_p4)
}
  0xd2   : > { %s529_s22 = scalar_lea.hbm %s808_s5, 512  ;;  %s533_s29 = scalar_lea.hbm %s864_s2, 2048 }
  0xd3   : > { %p530_p3 = scmp.ne.s32.totalorder %s808_s5, %s529_s22  ;;  %p534_p2 = scmp.lt.u32.totalorder %s808_s5, %s864_s2 }
  0xd4   : > { %p535_p5 = scmp.lt.u32.totalorder %s533_s29, %s529_s22  ;;  %p537_p8 = scmp.lt.u32.totalorder %s529_s22, %s808_s5 }
  0xd5   : > { %p531_p6 = pnand %p530_p3, %p871_p9 }
  0xd6   : > { %p536_p10 = por %p535_p5, %p534_p2 }
  0xd7   : > { %p532_p7 = pneg %p531_p6 }
  0xd8   : > { %p538_p12 = por %p537_p8, %p536_p10 }
  0xda   : > { %p539_p0 = pnand %p538_p12, %p532_p7 }
  0xdc   : > { %542 = shalt.err (!%p539_p0)
}
  0xdd   : > { %s621_s24 = smov 128   ;;  %s622_s12 = smov 256  }
  0xde   : > { %s623_s13 = smov 8  }
  0xdf   : > { %398 = dma.vmem_to_hbm [thread:$0]  (%p871_p9), %s803_s18, 512, %s808_s5, %s279_s27, %s621_s24, %s622_s12, %s623_s13  }
  0xe0 PF: > { %p409_p11 = scmp.ge.s32.totalorder %s613_s16, 2  ;;  %s308_s23 = sand.u32 1, %s585_s9  }
  0xe1   : > { %p872_p13 = scmp.ne.s32.totalorder %s869_s28, 0  ;;  %s309_s3 = scalar_lea.sflag [#allocation4], %s308_s23 }
  0xe3   : > { %p405_p1 = pnand %p409_p11, %p872_p13 }
  0xe5   : > { %580 = dma.done.wait (!%p405_p1), %s309_s3, 512  }
  0xe6   : > { %582 = vsyncadd (!%p405_p1), %s309_s3, 4294966784  ;;  %s18_s16 = sadd.s32 1, %s613_s16   ;;  %s873_s9 = smov %s589_s10 }
  0xe7   : > { %p15_p4 = scmp.ge.s32.totalorder %s18_s16, 6   ;;  %s874_s10 = smov %s593_s11 }
  0xe8   : > { %s875_s11 = smov %s717_s30  ;;  %s876_s12 = smov %s605_s14 }
  0xe9   : > { %s877_s13 = smov %s609_s15  ;;  %s878_s14 = smov %s881_s19 }
  0xea   : > { %s879_s15 = smov %s885_s20  ;;  %17 = sbr.rel (!%p15_p4) target bundleno = 7 (0x7), region = 73 }
  0xf1   :  { %314 = vsyncpa [#allocation3], 1 }
  0xf2   :  { %316 = vsyncpa [#allocation3 + $0x1], 1 }
  0xf3   :  { %317 = vsyncpa [#allocation4], 1 }
  0xf4   :  { %319 = vsyncpa [#allocation4 + $0x1], 1 }

</bundles_post_ra>
